<compile_context>
chip_gen: v7x
topology: tpu7x:2x2x1
jax: 0.10.0
libtpu: 0.0.40
codegen_flags: <defaults>
</compile_context>

<pallas_src>
import jax
import jax.numpy as jnp
from jax.experimental import pallas as pl
from jax.experimental.pallas import tpu as pltpu


def _round_up(x, m):
    return (x + m - 1) // m * m


def _sigmoid(z):
    # exp -> EUP, approx reciprocal -> EUP; only the add uses a VALU slot.
    return pl.reciprocal(1.0 + jnp.exp(-z), approx=True)


def _dot_t(w, x):
    """(O, I) contracted with (B, I) on the last dims -> (O, B).

    The MXU "A @ B^T" pattern (same as q @ k^T in flash attention): the small weight
    operand is the stationary one and the streamed activation tile is consumed in its
    HBM layout with no transpose copy.
    """
    return jax.lax.dot_general(
        w, x,
        dimension_numbers=(((1,), (1,)), ((), ())),
        preferred_element_type=jnp.float32)


def scene_disc_kernel(x1_ref, x2_ref,
                      w1a_ref, w1b_ref, b1_ref,
                      w2_ref, b2_ref,
                      w3_ref, b3_ref,
                      w4_ref, b4_ref,
                      w5_ref, b5_ref,
                      out_ref):
    """Whole 5-layer MLP for one batch tile, entirely in VMEM (feature-first)."""
    w1a = w1a_ref[...]
    w1b = w1b_ref[...]
    # x1/x2 stream from HBM in their native dtype; any cast to the MXU compute dtype
    # happens here on the VPU (hidden under the input DMA — no extra HBM pass).
    x1 = x1_ref[...].astype(w1a.dtype)            # (tile_b, P)
    x2 = x2_ref[...].astype(w1a.dtype)

    # Layer 1 fuses torch.cat((x1, x2), 1):  z1 = W1a @ x1^T + W1b @ x2^T + b1
    z = _dot_t(w1a, x1) + _dot_t(w1b, x2) + b1_ref[...]
    h = _sigmoid(z)                               # (pose_dim, tile_b), f32

    for w_ref, b_ref in ((w2_ref, b2_ref), (w3_ref, b3_ref),
                         (w4_ref, b4_ref), (w5_ref, b5_ref)):
        w = w_ref[...]                            # (out, in)
        z = jnp.dot(w, h.astype(w.dtype),
                    preferred_element_type=jnp.float32) + b_ref[...]
        h = _sigmoid(z)

    out_ref[...] = h.astype(out_ref.dtype)        # (1, tile_b): lane-dense store


def init_params(pose_dim, key):
    """Deterministic init matching nn.Linear shapes.

    Returns a list of (W, b) with W of shape (out, in) (PyTorch layout) and b of
    shape (out, 1).
    """
    dims_in = [pose_dim * 2, pose_dim, pose_dim // 2, pose_dim // 4, pose_dim // 8]
    dims_out = [pose_dim, pose_dim // 2, pose_dim // 4, pose_dim // 8, 1]
    params = []
    for d_in, d_out in zip(dims_in, dims_out):
        key, kw, kb = jax.random.split(key, 3)
        bound = 1.0 / (d_in ** 0.5)
        w = jax.random.uniform(kw, (d_out, d_in), jnp.float32, -bound, bound)
        b = jax.random.uniform(kb, (d_out, 1), jnp.float32, -bound, bound)
        params.append((w, b))
    return params


def scene_discriminator_forward(x1, x2, params, *, tile_b=2048,
                                compute_dtype=jnp.float32):
    """x1, x2: (B, pose_dim).  Returns (B, 1) float32.

    compute_dtype: dtype fed to the MXU (jnp.bfloat16 recommended on v6e/v7x);
    accumulation, biases and sigmoid always stay float32.  For minimum HBM traffic
    pass x1/x2 already in bf16 end-to-end.
    """
    B, P = x1.shape
    assert x2.shape == (B, P)

    # ---- batch tile selection ------------------------------------------------
    #  * large tile amortizes the ~0.35 us per-grid-step pipeline overhead
    #    (sweep 2048..4096 for huge batches)
    #  * multiple of 128 so the (1, tile_b) output block stays lane-dense and the
    #    (tile_b, P) input block satisfies the (8, 128) rule
    #  * capped so the grid is >= 2 whenever B allows it -> both v7x TCs get work
    tile_b = _round_up(max(int(tile_b), 128), 128)
    half_b = max(128, _round_up(pl.cdiv(B, 2), 128))
    tile_b = min(tile_b, half_b)
    grid = pl.cdiv(B, tile_b)          # ragged last block handled by Pallas (no jnp.pad)

    (w1, b1), (w2, b2), (w3, b3), (w4, b4), (w5, b5) = params
    # Split W1 so the concat never materializes; weights are tiny and VMEM-resident,
    # so casting them in the wrapper is free.
    w1a = w1[:, :P].astype(compute_dtype)
    w1b = w1[:, P:].astype(compute_dtype)
    weights = [w1a, w1b, w2.astype(compute_dtype), w3.astype(compute_dtype),
               w4.astype(compute_dtype), w5.astype(compute_dtype)]
    biases = [b.astype(jnp.float32) for b in (b1, b2, b3, b4, b5)]

    # Kernel arg order: x1, x2, w1a, w1b, b1, w2, b2, w3, b3, w4, b4, w5, b5
    flat_params = [weights[0], weights[1], biases[0],
                   weights[2], biases[1],
                   weights[3], biases[2],
                   weights[4], biases[3],
                   weights[5], biases[4]]

    # ---- explicit VMEM budget (double-buffered tiles + resident params + slack) ----
    in_bytes = 2 * 2 * tile_b * P * x1.dtype.itemsize          # x1 + x2, double-buffered
    out_bytes = 2 * tile_b * 4                                  # (1, tile_b) f32, double-buffered
    param_bytes = 2 * sum(int(p.size) * p.dtype.itemsize for p in flat_params)
    vmem_limit = int(min(max(in_bytes + out_bytes + param_bytes + (8 << 20), 32 << 20),
                         60 << 20))                             # stay under v7x's 64 MiB

    in_specs = [pl.BlockSpec((tile_b, P), lambda i: (i, 0)),
                pl.BlockSpec((tile_b, P), lambda i: (i, 0))]
    # Full-array blocks with constant (0,0) index -> weights/biases stay resident in VMEM.
    for p in flat_params:
        in_specs.append(pl.BlockSpec(p.shape, lambda i: (0, 0)))

    out_spec = pl.BlockSpec((1, tile_b), lambda i: (0, i))

    out = pl.pallas_call(
        scene_disc_kernel,
        out_shape=jax.ShapeDtypeStruct((1, B), jnp.float32),
        grid=(grid,),
        in_specs=in_specs,
        out_specs=out_spec,
        compiler_params=pltpu.CompilerParams(
            dimension_semantics=("parallel",),
            vmem_limit_bytes=vmem_limit,
        ),
    )(x1, x2, *flat_params)

    return out[0, :][:, None]


def reference_forward(x1, x2, params):
    h = jnp.concatenate([x1, x2], axis=1)
    for w, b in params:
        h = jax.nn.sigmoid(h @ w.T + b[:, 0])
    return h


if __name__ == "__main__":
    pose_dim = 64    # layer widths: 128 -> 64 -> 32 -> 16 -> 8 -> 1

    key = jax.random.PRNGKey(0)
    k1, k2, kp = jax.random.split(key, 3)
    params = init_params(pose_dim, kp)

    # Case 1: small batch (single partial tile, grid=1) — f32 and bf16 MXU paths.
    batch = 16
    x1 = jax.random.normal(k1, (batch, pose_dim), jnp.float32)
    x2 = jax.random.normal(k2, (batch, pose_dim), jnp.float32)
    ref = reference_forward(x1, x2, params)

    out = jax.block_until_ready(scene_discriminator_forward(x1, x2, params))
    assert out.shape == (batch, 1)
    assert jnp.allclose(out, ref, atol=5e-3, rtol=5e-3), "f32 path mismatch vs reference"

    out_bf16 = jax.block_until_ready(
        scene_discriminator_forward(x1, x2, params, compute_dtype=jnp.bfloat16))
    assert jnp.allclose(out_bf16, ref, atol=5e-2, rtol=5e-2), "bf16 path mismatch vs reference"

    # Case 2: batch not divisible by the tile (grid=2 with a ragged boundary block,
    # exercising the no-jnp.pad path and the grid>=2 megacore cap).
    batch2 = 300
    k3, k4 = jax.random.split(k1)
    y1 = jax.random.normal(k3, (batch2, pose_dim), jnp.float32)
    y2 = jax.random.normal(k4, (batch2, pose_dim), jnp.float32)
    ref2 = reference_forward(y1, y2, params)
    out2 = jax.block_until_ready(scene_discriminator_forward(y1, y2, params))
    assert out2.shape == (batch2, 1)
    assert jnp.allclose(out2, ref2, atol=5e-3, rtol=5e-3), "ragged-batch path mismatch"

    print("KERNEL_OK")
</pallas_src>

<mosaic_0001>
module attributes {stable_mosaic.version = 11 : i64} {
  func.func @scene_disc_kernel(%arg0: i32, %arg1: memref<128x64xf32, #tpu.memory_space<vmem>>, %arg2: memref<128x64xf32, #tpu.memory_space<vmem>>, %arg3: memref<64x64xf32, #tpu.memory_space<vmem>>, %arg4: memref<64x64xf32, #tpu.memory_space<vmem>>, %arg5: memref<64x1xf32, #tpu.memory_space<vmem>>, %arg6: memref<32x64xf32, #tpu.memory_space<vmem>>, %arg7: memref<32x1xf32, #tpu.memory_space<vmem>>, %arg8: memref<16x32xf32, #tpu.memory_space<vmem>>, %arg9: memref<16x1xf32, #tpu.memory_space<vmem>>, %arg10: memref<8x16xf32, #tpu.memory_space<vmem>>, %arg11: memref<8x1xf32, #tpu.memory_space<vmem>>, %arg12: memref<1x8xf32, #tpu.memory_space<vmem>>, %arg13: memref<1x1xf32, #tpu.memory_space<vmem>>, %arg14: memref<1x128xf32, #tpu.memory_space<vmem>>) attributes {dimension_semantics = [#tpu.dimension_semantics<parallel>], iteration_bounds = array<i64: 1>, scalar_prefetch = 0 : i64, scratch_operands = 0 : i64, tpu.core_type = #tpu.core_type<tc>, window_params = [{transform_indices = @transform_0, window_bounds = array<i64: 128, 64>}, {transform_indices = @transform_1, window_bounds = array<i64: 128, 64>}, {pipeline_mode = #tpu.pipeline_mode<synchronous>, transform_indices = @transform_2, window_bounds = array<i64: 64, 64>}, {pipeline_mode = #tpu.pipeline_mode<synchronous>, transform_indices = @transform_3, window_bounds = array<i64: 64, 64>}, {pipeline_mode = #tpu.pipeline_mode<synchronous>, transform_indices = @transform_4, window_bounds = array<i64: 64, 1>}, {pipeline_mode = #tpu.pipeline_mode<synchronous>, transform_indices = @transform_5, window_bounds = array<i64: 32, 64>}, {pipeline_mode = #tpu.pipeline_mode<synchronous>, transform_indices = @transform_6, window_bounds = array<i64: 32, 1>}, {pipeline_mode = #tpu.pipeline_mode<synchronous>, transform_indices = @transform_7, window_bounds = array<i64: 16, 32>}, {pipeline_mode = #tpu.pipeline_mode<synchronous>, transform_indices = @transform_8, window_bounds = array<i64: 16, 1>}, {pipeline_mode = #tpu.pipeline_mode<synchronous>, transform_indices = @transform_9, window_bounds = array<i64: 8, 16>}, {pipeline_mode = #tpu.pipeline_mode<synchronous>, transform_indices = @transform_10, window_bounds = array<i64: 8, 1>}, {pipeline_mode = #tpu.pipeline_mode<synchronous>, transform_indices = @transform_11, window_bounds = array<i64: 1, 8>}, {pipeline_mode = #tpu.pipeline_mode<synchronous>, transform_indices = @transform_12, window_bounds = array<i64: 1, 1>}, {transform_indices = @transform_13, window_bounds = array<i64: 1, 128>}]} {
    %c0 = arith.constant 0 : index
    %c0_0 = arith.constant 0 : index
    %0 = vector.load %arg3[%c0, %c0_0] : memref<64x64xf32, #tpu.memory_space<vmem>>, vector<64x64xf32>
    %c0_1 = arith.constant 0 : index
    %c0_2 = arith.constant 0 : index
    %1 = vector.load %arg4[%c0_1, %c0_2] : memref<64x64xf32, #tpu.memory_space<vmem>>, vector<64x64xf32>
    %c0_3 = arith.constant 0 : index
    %c0_4 = arith.constant 0 : index
    %2 = vector.load %arg1[%c0_3, %c0_4] : memref<128x64xf32, #tpu.memory_space<vmem>>, vector<128x64xf32>
    %c0_5 = arith.constant 0 : index
    %c0_6 = arith.constant 0 : index
    %3 = vector.load %arg2[%c0_5, %c0_6] : memref<128x64xf32, #tpu.memory_space<vmem>>, vector<128x64xf32>
    %cst = arith.constant dense<0.000000e+00> : vector<64x128xf32>
    %4 = tpu.matmul %0, %2, %cst {dimension_numbers = #tpu.dot_dimension_numbers<[1], [1], [0], [0], [0, 0, 1, 0], [], []>} : vector<64x64xf32>, vector<128x64xf32>, vector<64x128xf32> -> vector<64x128xf32>
    %cst_7 = arith.constant dense<0.000000e+00> : vector<64x128xf32>
    %5 = tpu.matmul %1, %3, %cst_7 {dimension_numbers = #tpu.dot_dimension_numbers<[1], [1], [0], [0], [0, 0, 1, 0], [], []>} : vector<64x64xf32>, vector<128x64xf32>, vector<64x128xf32> -> vector<64x128xf32>
    %6 = arith.addf %4, %5 : vector<64x128xf32>
    %c0_8 = arith.constant 0 : index
    %c0_9 = arith.constant 0 : index
    %7 = vector.load %arg5[%c0_8, %c0_9] : memref<64x1xf32, #tpu.memory_space<vmem>>, vector<64x1xf32>
    %8 = vector.broadcast %7 : vector<64x1xf32> to vector<64x128xf32>
    %9 = arith.addf %6, %8 : vector<64x128xf32>
    %cst_10 = arith.constant 0.000000e+00 : f32
    %10 = vector.broadcast %cst_10 : f32 to vector<64x128xf32>
    %11 = arith.subf %10, %9 : vector<64x128xf32>
    %12 = math.exp %11 : vector<64x128xf32>
    %cst_11 = arith.constant 1.000000e+00 : f32
    %13 = vector.broadcast %cst_11 : f32 to vector<64x128xf32>
    %14 = arith.addf %13, %12 : vector<64x128xf32>
    %15 = tpu.reciprocal %14 {approx = true} : vector<64x128xf32> -> vector<64x128xf32>
    %c0_12 = arith.constant 0 : index
    %c0_13 = arith.constant 0 : index
    %16 = vector.load %arg6[%c0_12, %c0_13] : memref<32x64xf32, #tpu.memory_space<vmem>>, vector<32x64xf32>
    %cst_14 = arith.constant dense<0.000000e+00> : vector<32x128xf32>
    %17 = tpu.matmul %16, %15, %cst_14 {dimension_numbers = #tpu.dot_dimension_numbers<[1], [0], [0], [1], [0, 0, 1, 1], [], []>} : vector<32x64xf32>, vector<64x128xf32>, vector<32x128xf32> -> vector<32x128xf32>
    %c0_15 = arith.constant 0 : index
    %c0_16 = arith.constant 0 : index
    %18 = vector.load %arg7[%c0_15, %c0_16] : memref<32x1xf32, #tpu.memory_space<vmem>>, vector<32x1xf32>
    %19 = vector.broadcast %18 : vector<32x1xf32> to vector<32x128xf32>
    %20 = arith.addf %17, %19 : vector<32x128xf32>
    %cst_17 = arith.constant 0.000000e+00 : f32
    %21 = vector.broadcast %cst_17 : f32 to vector<32x128xf32>
    %22 = arith.subf %21, %20 : vector<32x128xf32>
    %23 = math.exp %22 : vector<32x128xf32>
    %cst_18 = arith.constant 1.000000e+00 : f32
    %24 = vector.broadcast %cst_18 : f32 to vector<32x128xf32>
    %25 = arith.addf %24, %23 : vector<32x128xf32>
    %26 = tpu.reciprocal %25 {approx = true} : vector<32x128xf32> -> vector<32x128xf32>
    %c0_19 = arith.constant 0 : index
    %c0_20 = arith.constant 0 : index
    %27 = vector.load %arg8[%c0_19, %c0_20] : memref<16x32xf32, #tpu.memory_space<vmem>>, vector<16x32xf32>
    %cst_21 = arith.constant dense<0.000000e+00> : vector<16x128xf32>
    %28 = tpu.matmul %27, %26, %cst_21 {dimension_numbers = #tpu.dot_dimension_numbers<[1], [0], [0], [1], [0, 0, 1, 1], [], []>} : vector<16x32xf32>, vector<32x128xf32>, vector<16x128xf32> -> vector<16x128xf32>
    %c0_22 = arith.constant 0 : index
    %c0_23 = arith.constant 0 : index
    %29 = vector.load %arg9[%c0_22, %c0_23] : memref<16x1xf32, #tpu.memory_space<vmem>>, vector<16x1xf32>
    %30 = vector.broadcast %29 : vector<16x1xf32> to vector<16x128xf32>
    %31 = arith.addf %28, %30 : vector<16x128xf32>
    %cst_24 = arith.constant 0.000000e+00 : f32
    %32 = vector.broadcast %cst_24 : f32 to vector<16x128xf32>
    %33 = arith.subf %32, %31 : vector<16x128xf32>
    %34 = math.exp %33 : vector<16x128xf32>
    %cst_25 = arith.constant 1.000000e+00 : f32
    %35 = vector.broadcast %cst_25 : f32 to vector<16x128xf32>
    %36 = arith.addf %35, %34 : vector<16x128xf32>
    %37 = tpu.reciprocal %36 {approx = true} : vector<16x128xf32> -> vector<16x128xf32>
    %c0_26 = arith.constant 0 : index
    %c0_27 = arith.constant 0 : index
    %38 = vector.load %arg10[%c0_26, %c0_27] : memref<8x16xf32, #tpu.memory_space<vmem>>, vector<8x16xf32>
    %cst_28 = arith.constant dense<0.000000e+00> : vector<8x128xf32>
    %39 = tpu.matmul %38, %37, %cst_28 {dimension_numbers = #tpu.dot_dimension_numbers<[1], [0], [0], [1], [0, 0, 1, 1], [], []>} : vector<8x16xf32>, vector<16x128xf32>, vector<8x128xf32> -> vector<8x128xf32>
    %c0_29 = arith.constant 0 : index
    %c0_30 = arith.constant 0 : index
    %40 = vector.load %arg11[%c0_29, %c0_30] : memref<8x1xf32, #tpu.memory_space<vmem>>, vector<8x1xf32>
    %41 = vector.broadcast %40 : vector<8x1xf32> to vector<8x128xf32>
    %42 = arith.addf %39, %41 : vector<8x128xf32>
    %cst_31 = arith.constant 0.000000e+00 : f32
    %43 = vector.broadcast %cst_31 : f32 to vector<8x128xf32>
    %44 = arith.subf %43, %42 : vector<8x128xf32>
    %45 = math.exp %44 : vector<8x128xf32>
    %cst_32 = arith.constant 1.000000e+00 : f32
    %46 = vector.broadcast %cst_32 : f32 to vector<8x128xf32>
    %47 = arith.addf %46, %45 : vector<8x128xf32>
    %48 = tpu.reciprocal %47 {approx = true} : vector<8x128xf32> -> vector<8x128xf32>
    %c0_33 = arith.constant 0 : index
    %c0_34 = arith.constant 0 : index
    %49 = vector.load %arg12[%c0_33, %c0_34] : memref<1x8xf32, #tpu.memory_space<vmem>>, vector<1x8xf32>
    %cst_35 = arith.constant dense<0.000000e+00> : vector<1x128xf32>
    %50 = tpu.matmul %49, %48, %cst_35 {dimension_numbers = #tpu.dot_dimension_numbers<[1], [0], [0], [1], [0, 0, 1, 1], [], []>} : vector<1x8xf32>, vector<8x128xf32>, vector<1x128xf32> -> vector<1x128xf32>
    %c0_36 = arith.constant 0 : index
    %c0_37 = arith.constant 0 : index
    %51 = vector.load %arg13[%c0_36, %c0_37] : memref<1x1xf32, #tpu.memory_space<vmem>>, vector<1x1xf32>
    %52 = vector.broadcast %51 : vector<1x1xf32> to vector<1x128xf32>
    %53 = arith.addf %50, %52 : vector<1x128xf32>
    %cst_38 = arith.constant 0.000000e+00 : f32
    %54 = vector.broadcast %cst_38 : f32 to vector<1x128xf32>
    %55 = arith.subf %54, %53 : vector<1x128xf32>
    %56 = math.exp %55 : vector<1x128xf32>
    %cst_39 = arith.constant 1.000000e+00 : f32
    %57 = vector.broadcast %cst_39 : f32 to vector<1x128xf32>
    %58 = arith.addf %57, %56 : vector<1x128xf32>
    %59 = tpu.reciprocal %58 {approx = true} : vector<1x128xf32> -> vector<1x128xf32>
    %c0_40 = arith.constant 0 : index
    %c0_41 = arith.constant 0 : index
    %60 = vector.load %arg14[%c0_40, %c0_41] : memref<1x128xf32, #tpu.memory_space<vmem>>, vector<1x128xf32>
    tpu.vector_store %arg14[%c0_40, %c0_41], %59 {strides = array<i32>} : memref<1x128xf32, #tpu.memory_space<vmem>>, vector<1x128xf32>,
    return
  }
  func.func @transform_0(%arg0: i32) -> (i32, i32) {
    %c0_i32 = arith.constant 0 : i32
    %c0_i32_0 = arith.constant 0 : i32
    return %arg0, %c0_i32 : i32, i32
  }
  func.func @transform_1(%arg0: i32) -> (i32, i32) {
    %c0_i32 = arith.constant 0 : i32
    %c0_i32_0 = arith.constant 0 : i32
    return %arg0, %c0_i32 : i32, i32
  }
  func.func @transform_2(%arg0: i32) -> (i32, i32) {
    %c0_i32 = arith.constant 0 : i32
    %c0_i32_0 = arith.constant 0 : i32
    %c0_i32_1 = arith.constant 0 : i32
    return %c0_i32, %c0_i32_0 : i32, i32
  }
  func.func @transform_3(%arg0: i32) -> (i32, i32) {
    %c0_i32 = arith.constant 0 : i32
    %c0_i32_0 = arith.constant 0 : i32
    %c0_i32_1 = arith.constant 0 : i32
    return %c0_i32, %c0_i32_0 : i32, i32
  }
  func.func @transform_4(%arg0: i32) -> (i32, i32) {
    %c0_i32 = arith.constant 0 : i32
    %c0_i32_0 = arith.constant 0 : i32
    %c0_i32_1 = arith.constant 0 : i32
    return %c0_i32, %c0_i32_0 : i32, i32
  }
  func.func @transform_5(%arg0: i32) -> (i32, i32) {
    %c0_i32 = arith.constant 0 : i32
    %c0_i32_0 = arith.constant 0 : i32
    %c0_i32_1 = arith.constant 0 : i32
    return %c0_i32, %c0_i32_0 : i32, i32
  }
  func.func @transform_6(%arg0: i32) -> (i32, i32) {
    %c0_i32 = arith.constant 0 : i32
    %c0_i32_0 = arith.constant 0 : i32
    %c0_i32_1 = arith.constant 0 : i32
    return %c0_i32, %c0_i32_0 : i32, i32
  }
  func.func @transform_7(%arg0: i32) -> (i32, i32) {
    %c0_i32 = arith.constant 0 : i32
    %c0_i32_0 = arith.constant 0 : i32
    %c0_i32_1 = arith.constant 0 : i32
    return %c0_i32, %c0_i32_0 : i32, i32
  }
  func.func @transform_8(%arg0: i32) -> (i32, i32) {
    %c0_i32 = arith.constant 0 : i32
    %c0_i32_0 = arith.constant 0 : i32
    %c0_i32_1 = arith.constant 0 : i32
    return %c0_i32, %c0_i32_0 : i32, i32
  }
  func.func @transform_9(%arg0: i32) -> (i32, i32) {
    %c0_i32 = arith.constant 0 : i32
    %c0_i32_0 = arith.constant 0 : i32
    %c0_i32_1 = arith.constant 0 : i32
    return %c0_i32, %c0_i32_0 : i32, i32
  }
  func.func @transform_10(%arg0: i32) -> (i32, i32) {
    %c0_i32 = arith.constant 0 : i32
    %c0_i32_0 = arith.constant 0 : i32
    %c0_i32_1 = arith.constant 0 : i32
    return %c0_i32, %c0_i32_0 : i32, i32
  }
  func.func @transform_11(%arg0: i32) -> (i32, i32) {
    %c0_i32 = arith.constant 0 : i32
    %c0_i32_0 = arith.constant 0 : i32
    %c0_i32_1 = arith.constant 0 : i32
    return %c0_i32, %c0_i32_0 : i32, i32
  }
  func.func @transform_12(%arg0: i32) -> (i32, i32) {
    %c0_i32 = arith.constant 0 : i32
    %c0_i32_0 = arith.constant 0 : i32
    %c0_i32_1 = arith.constant 0 : i32
    return %c0_i32, %c0_i32_0 : i32, i32
  }
  func.func @transform_13(%arg0: i32) -> (i32, i32) {
    %c0_i32 = arith.constant 0 : i32
    %c0_i32_0 = arith.constant 0 : i32
    return %c0_i32, %arg0 : i32, i32
  }
}

</mosaic_0001>

<bundles_post_ra>
// kernel: tpu_custom_call.1
= control target key start
LH: loop header
LB: loop body
LE: loop exit
PB: predicated region body
PF: predicated region fallthrough
CT: control target
= control target key end

     0   :  { %s1938_s0 = inlined_call_operand.hbm [shape: f32[16,64], index: 0, kind: input, shape index: {}]   ;;  %s1939_s1 = inlined_call_operand.hbm [shape: f32[16,64], index: 1, kind: input, shape index: {}]   ;;  %s1940_s2 = inlined_call_operand.vmem [shape: f32[64,64], index: 2, kind: input, shape index: {}]   ;;  %s1941_s3 = inlined_call_operand.vmem [shape: f32[64,64], index: 3, kind: input, shape index: {}]   ;;  %s1942_s4 = inlined_call_operand.vmem [shape: f32[64,1], index: 4, kind: input, shape index: {}]   ;;  %s1943_s5 = inlined_call_operand.hbm [shape: f32[32,64], index: 5, kind: input, shape index: {}]   ;;  %s1944_s6 = inlined_call_operand.vmem [shape: f32[32,1], index: 6, kind: input, shape index: {}]   ;;  %s1945_s7 = inlined_call_operand.vmem [shape: f32[16,32], index: 7, kind: input, shape index: {}]   ;;  %s1946_s8 = inlined_call_operand.vmem [shape: f32[16,1], index: 8, kind: input, shape index: {}]   ;;  %s1947_s9 = inlined_call_operand.vmem [shape: f32[8,16], index: 9, kind: input, shape index: {}]   ;;  %s1948_s10 = inlined_call_operand.vmem [shape: f32[8,1], index: 10, kind: input, shape index: {}]   ;;  %s1949_s11 = inlined_call_operand.vmem [shape: f32[1,8], index: 11, kind: input, shape index: {}]   ;;  %s1950_s12 = inlined_call_operand.<no memory space> [shape: f32[1,1], index: 12, kind: input, shape index: {}]   ;;  %s1951_s13 = inlined_call_operand.hbm [shape: f32[1,16], index: 13, kind: output, shape index: {}]  }
   0x1   :  { %v18_v0 = vstv %s1950_s12 }
   0x2   :  { %19 = vst [vmem:[#allocation2] sm:$0x1] %v18_v0 }
   0x3   :  { %20 = vsyncpa [#allocation4], 0 }
   0x4   :  { %21 = vsyncpa [#allocation7], 0 }
   0x5   :  { %22 = vsyncpa [#allocation5], 0 }
   0x6   :  { %27 = vsyncadd [#allocation4], 1792  ;;  %s1592_s27 = smov [#allocation3]   ;;  %s1498_s14 = scalar_lea.hbm %s1938_s0, 256 }
   0x7   :  { %s28_s28 = sshll.u32 %s1592_s27, 4  ;;  %p1499_p0 = scmp.ne.s32.totalorder %s1938_s0, %s1498_s14  ;;  %s29_s28 = int_to_ptr.vmem [resolvable:$true] %s28_s28 }
   0x8   :  { %p1502_p1 = scmp.lt.u32.totalorder %s1498_s14, %s1938_s0 }
   0xa   :  { %p1504_p2 = pnand %p1502_p1, %p1499_p0 }
   0xc   :  { %1507 = shalt.err (!%p1504_p2)
}
   0xd   :  { %s1508_s12 = scalar_lea.vmem %s29_s28, 256  ;;  %s1512_s19 = scalar_lea.vmem %s29_s28, 2048 }
   0xe   :  { %p1509_p3 = scmp.ne.s32.totalorder %s29_s28, %s1508_s12  ;;  %p1513_p4 = scmp.lt.s32.totalorder %s29_s28, %s29_s28 }
   0xf   :  { %p1514_p5 = scmp.lt.s32.totalorder %s1512_s19, %s1508_s12 }
  0x11   :  { %p1515_p6 = por %p1514_p5, %p1513_p4 }
  0x13   :  { %p1516_p7 = pnand %p1515_p6, %p1509_p3 }
  0x15   :  { %1519 = shalt.err (!%p1516_p7)
}
  0x16   :  { %s1593_s20 = smov 128   ;;  %s1594_s21 = smov 8  }
  0x17   :  { %34 = dma.hbm_to_vmem [thread:$0]  %s1938_s0, 256, %s29_s28, [#allocation4], %s1593_s20, %s1593_s20, %s1594_s21  }
  0x18   :  { %39 = vsyncadd [#allocation7], 1792  ;;  %s1595_s24 = smov [#allocation6]   ;;  %s1596_s26 = smov [#allocation8]  }
  0x19   :  { %s40_s25 = sshll.u32 %s1595_s24, 4  ;;  %s58_s27 = sshll.u32 %s1596_s26, 4  ;;  %s41_s25 = int_to_ptr.vmem [resolvable:$true] %s40_s25  ;;  %s1690_s27 = int_to_ptr.vmem [resolvable:$true] %s58_s27 }
  0x1a   :  { %s1520_s14 = scalar_lea.hbm %s1939_s1, 256 }
  0x1b   :  { %p1521_p8 = scmp.ne.s32.totalorder %s1939_s1, %s1520_s14  ;;  %p1524_p9 = scmp.lt.u32.totalorder %s1520_s14, %s1939_s1 }
  0x1d   :  { %p1526_p10 = pnand %p1524_p9, %p1521_p8 }
  0x1f   :  { %1529 = shalt.err (!%p1526_p10)
}
  0x20   :  { %s1530_s0 = scalar_lea.vmem %s41_s25, 256  ;;  %s1534_s28 = scalar_lea.vmem %s41_s25, 2048 }
  0x21   :  { %p1531_p11 = scmp.ne.s32.totalorder %s41_s25, %s1530_s0  ;;  %p1535_p12 = scmp.lt.s32.totalorder %s41_s25, %s41_s25 }
  0x22   :  { %p1536_p13 = scmp.lt.s32.totalorder %s1534_s28, %s1530_s0 }
  0x24   :  { %p1537_p0 = por %p1536_p13, %p1535_p12 }
  0x26   :  { %p1538_p1 = pnand %p1537_p0, %p1531_p11 }
  0x28   :  { %1541 = shalt.err (!%p1538_p1)
}
  0x29   :  { %46 = dma.hbm_to_vmem [thread:$0]  %s1939_s1, 256, %s41_s25, [#allocation7], %s1593_s20, %s1593_s20, %s1594_s21  }
  0x2a   :  { %s1542_s24 = scalar_lea.hbm %s1943_s5, 512 }
  0x2b   :  { %p1543_p2 = scmp.ne.s32.totalorder %s1943_s5, %s1542_s24  ;;  %p1546_p3 = scmp.lt.u32.totalorder %s1542_s24, %s1943_s5 }
  0x2d   :  { %p1548_p4 = pnand %p1546_p3, %p1543_p2 }
  0x2f   :  { %1551 = shalt.err (!%p1548_p4)
}
  0x30   :  { %s1552_s15 = scalar_lea.vmem %s1690_s27, 512  ;;  %p1557_p6 = scmp.lt.s32.totalorder %s1690_s27, %s1690_s27 }
  0x31   :  { %p1553_p5 = scmp.ne.s32.totalorder %s1690_s27, %s1552_s15  ;;  %p1558_p7 = scmp.lt.s32.totalorder %s1552_s15, %s1552_s15 }
  0x33   :  { %p1559_p8 = por %p1558_p7, %p1557_p6 }
  0x35   :  { %p1560_p9 = pnand %p1559_p8, %p1553_p5 }
  0x37   :  { %1563 = shalt.err (!%p1560_p9)
}
  0x38   :  { %64 = dma.hbm_to_vmem [thread:$0]  %s1943_s5, 512, %s1690_s27, [#allocation7], %s1593_s20, %s1593_s20, %s1594_s21  }
  0x39   :  { %1586 = dma.done.wait [#allocation4], 2048  }
  0x3a   :  { %1587 = vsyncadd [#allocation4], 4294965248 }
  0x3b   :  { %1588 = dma.done.wait [#allocation7], 2560  }
  0x3c   :  { %1589 = vsyncadd [#allocation7], 4294964736  ;;  %v1597_v1 = vmov 0   ;;  %vm136_vm0 = vcmask 523264   ;;  %v120_v3 = vld [vmem:[#allocation6] sm:$0xff]  ;;  %v121_v4 = vld [vmem:[#allocation6 + $0x8] sm:$0xff] }
  0x3d   :  { %1432 = vset.pattern.permute.xlu0 %v1597_v1  ;;  %1433 = vset.pattern.permute.xlu1 %v1597_v1  ;;  %vm1729_vm1 = vmpackc.low %vm136_vm0, %vm136_vm0  ;;  %v104_v5 = vld [vmem:[#allocation3] sm:$0xff]  ;;  %v1291_v6 = vpack.c.bf16 %v121_v4, %v120_v3  ;;  %v105_v7 = vld [vmem:[#allocation3 + $0x8] sm:$0xff]  ;;  %vm746_vm2 = vcmask 261120   ;;  %vm1599_vm3 = vmmov 0   ;;  %vm845_vm4 = vcmask 130048  }
  0x3e   :  { %v122_v8 = vld [vmem:[#allocation6 + $0x10] sm:$0xff]  ;;  %v123_v9 = vld [vmem:[#allocation6 + $0x18] sm:$0xff]  ;;  %v1339_v10 = vpack.c.bf16 %v105_v7, %v104_v5  ;;  %v124_v15 = vld [vmem:[#allocation6 + $0x20] sm:$0xff]  ;;  %vm935_vm5 = vcmask 64512  }
  0x3f   :  { %v1297_v11 = vpack.c.bf16 %v123_v9, %v122_v8  ;;  %v106_v12 = vld [vmem:[#allocation3 + $0x10] sm:$0xff]  ;;  %v107_v13 = vld [vmem:[#allocation3 + $0x18] sm:$0xff]  ;;  %1293 = vmatprep.subr.msk.bf16.mxu1 %vm1729_vm1, %v1291_v6  ;;  %v125_v16 = vld [vmem:[#allocation6 + $0x28] sm:$0xff] }
  0x40   :  { %v1345_v14 = vpack.c.bf16 %v107_v13, %v106_v12  ;;  %1341 = vmatprep.subr.msk.bf16.mxu0 %vm1729_vm1, %v1339_v10  ;;  %1296 = vmatpush3.bf16.xpose.msk.msra.mxu1 %vm1729_vm1, %v1291_v6  ;;  %v108_v17 = vld [vmem:[#allocation3 + $0x20] sm:$0xff]  ;;  %v109_v18 = vld [vmem:[#allocation3 + $0x28] sm:$0xff]  ;;  %v1303_v19 = vpack.c.bf16 %v125_v16, %v124_v15  ;;  %v126_v23 = vld [vmem:[#allocation6 + $0x30] sm:$0xff] }
  0x41   :  { %1344 = vmatpush3.bf16.xpose.msk.msra.mxu0 %vm1729_vm1, %v1339_v10  ;;  %1299 = vmatprep.subr.msk.bf16.mxu1 %vm1729_vm1, %v1297_v11  ;;  %v1351_v20 = vpack.c.bf16 %v109_v18, %v108_v17  ;;  %v96_v21 = vld [vmem:[%s1941_s3] sm:$0xff]  ;;  %v110_v25 = vld [vmem:[#allocation3 + $0x30] sm:$0xff]  ;;  %v492_v31 = vld [vmem:[%s1942_s4 + $0x8] sm:$0xff] }
  0x42   :  { %1347 = vmatprep.subr.msk.bf16.mxu0 %vm1729_vm1, %v1345_v14  ;;  %1190 = vmatprep.mubr.msk.f32.mxu1 %vm136_vm0, %v96_v21  ;;  %v88_v22 = vld [vmem:[%s1940_s2] sm:$0xff]  ;;  %v493_v28 = vld [vmem:[%s1942_s4 + $0x10] sm:$0xff]  ;;  %v494_v32 = vld [vmem:[%s1942_s4 + $0x18] sm:$0xff] }
  0x43   :  { %1234 = vmatprep.mubr.msk.f32.mxu0 %vm136_vm0, %v88_v22  ;;  %v127_v24 = vld [vmem:[#allocation6 + $0x38] sm:$0xff]  ;;  %511 = vperm.xlu1 %1433, %v493_v28   ;;  %v128_v33 = vld [vmem:[#allocation6 + $0x40] sm:$0xff]  ;;  %v129_v34 = vld [vmem:[#allocation6 + $0x48] sm:$0xff] }
  0x44   :  { %v111_v26 = vld [vmem:[#allocation3 + $0x38] sm:$0xff]  ;;  %v1309_v29 = vpack.c.bf16 %v127_v24, %v126_v23  ;;  %v112_v35 = vld [vmem:[#allocation3 + $0x40] sm:$0xff]  ;;  %v113_v36 = vld [vmem:[#allocation3 + $0x48] sm:$0xff]  ;;  %v1315_v39 = vpack.c.bf16 %v129_v34, %v128_v33 }
  0x45   :  { %v491_v27 = vld [vmem:[%s1942_s4] sm:$0xff]  ;;  %v1357_v30 = vpack.c.bf16 %v111_v26, %v110_v25  ;;  %v496_v38 = vld [vmem:[%s1942_s4 + $0x28] sm:$0xff]  ;;  %v1363_v40 = vpack.c.bf16 %v113_v36, %v112_v35  ;;  %v497_v41 = vld [vmem:[%s1942_s4 + $0x30] sm:$0xff] }
  0x46   :  { %501 = vperm.xlu0 %1432, %v491_v27   ;;  %v495_v37 = vld [vmem:[%s1942_s4 + $0x20] sm:$0xff]  ;;  %v498_v42 = vld [vmem:[%s1942_s4 + $0x38] sm:$0xff]  ;;  %v592_v48 = vld [vmem:[%s1944_s6 + $0x8] sm:$0xff] }
  0x47   :  { %516 = vperm.xlu1 %1433, %v494_v32   ;;  %v130_v43 = vld [vmem:[#allocation6 + $0x50] sm:$0xff]  ;;  %v131_v44 = vld [vmem:[#allocation6 + $0x58] sm:$0xff]  ;;  %v132_v53 = vld [vmem:[#allocation6 + $0x60] sm:$0xff] }
  0x48   :  { %1302 = vmatpush3.bf16.xpose.msk.msra.mxu1 %vm1729_vm1, %v1297_v11  ;;  %v114_v45 = vld [vmem:[#allocation3 + $0x50] sm:$0xff]  ;;  %v115_v46 = vld [vmem:[#allocation3 + $0x58] sm:$0xff]  ;;  %v1321_v49 = vpack.c.bf16 %v131_v44, %v130_v43  ;;  %v133_v54 = vld [vmem:[#allocation6 + $0x68] sm:$0xff] }
  0x49   :  { %1350 = vmatpush3.bf16.xpose.msk.msra.mxu0 %vm1729_vm1, %v1345_v14  ;;  %1305 = vmatprep.subr.msk.bf16.mxu1 %vm1729_vm1, %v1303_v19  ;;  %v591_v47 = vld [vmem:[%s1944_s6] sm:$0xff]  ;;  %v1369_v50 = vpack.c.bf16 %v115_v46, %v114_v45  ;;  %v593_v51 = vld [vmem:[%s1944_s6 + $0x10] sm:$0xff]  ;;  %v594_v52 = vld [vmem:[%s1944_s6 + $0x18] sm:$0xff]  ;;  %v1327_v59 = vpack.c.bf16 %v133_v54, %v132_v53 }
  0x4a   :  { %1353 = vmatprep.subr.msk.bf16.mxu0 %vm1729_vm1, %v1351_v20  ;;  %506 = vperm.xlu0 %1432, %v492_v31   ;;  %v116_v55 = vld [vmem:[#allocation3 + $0x60] sm:$0xff]  ;;  %v117_v56 = vld [vmem:[#allocation3 + $0x68] sm:$0xff]  ;;  %v925_v62 = vld [vmem:[#allocation2] sm:$0x1] }
  0x4b   :  { %526 = vperm.xlu1 %1433, %v496_v38   ;;  %v734_v57 = vld [vmem:[%s1946_s8] sm:$0xff]  ;;  %v735_v58 = vld [vmem:[%s1946_s8 + $0x8] sm:$0xff]  ;;  %v1375_v60 = vpack.c.bf16 %v117_v56, %v116_v55  ;;  %v134_v63 = vld [vmem:[#allocation6 + $0x70] sm:$0xff] }
  0x4c   :  { %v839_v61 = vld [vmem:[%s1948_s10] sm:$0xff]  ;;  %v118_v1 = vld [vmem:[#allocation3 + $0x70] sm:$0xff]  ;;  %v97_v6 = vld [vmem:[%s1941_s3 + $0x8] sm:$0xff] }
  0x4d   :  { %v135_v0 = vld [vmem:[#allocation6 + $0x78] sm:$0xff]  ;;  %v89_v7 = vld [vmem:[%s1940_s2 + $0x8] sm:$0xff]  ;;  %v98_v8 = vld [vmem:[%s1941_s3 + $0x10] sm:$0xff] }
  0x4e   :  { %521 = vperm.xlu0 %1432, %v495_v37   ;;  %v119_v3 = vld [vmem:[#allocation3 + $0x78] sm:$0xff]  ;;  %v1333_v4 = vpack.c.bf16 %v135_v0, %v134_v63  ;;  %v90_v9 = vld [vmem:[%s1940_s2 + $0x10] sm:$0xff]  ;;  %v101_v13 = vld [vmem:[%s1941_s3 + $0x28] sm:$0xff] }
  0x4f   :  { %536 = vperm.xlu1 %1433, %v498_v42   ;;  %v1381_v5 = vpack.c.bf16 %v119_v3, %v118_v1  ;;  %v99_v2 = vld [vmem:[%s1941_s3 + $0x18] sm:$0xff]  ;;  %v100_v11 = vld [vmem:[%s1941_s3 + $0x20] sm:$0xff]  ;;  %v93_v14 = vld [vmem:[%s1940_s2 + $0x28] sm:$0xff] }
  0x50   :  { %1308 = vmatpush3.bf16.xpose.msk.msra.mxu1 %vm1729_vm1, %v1303_v19  ;;  %v91_v10 = vld [vmem:[%s1940_s2 + $0x18] sm:$0xff]  ;;  %v92_v12 = vld [vmem:[%s1940_s2 + $0x20] sm:$0xff]  ;;  %v102_v15 = vld [vmem:[%s1941_s3 + $0x30] sm:$0xff] }
  0x51   :  { %1356 = vmatpush3.bf16.xpose.msk.msra.mxu0 %vm1729_vm1, %v1351_v20  ;;  %1311 = vmatprep.subr.msk.bf16.mxu1 %vm1729_vm1, %v1309_v29  ;;  %v94_v16 = vld [vmem:[%s1940_s2 + $0x30] sm:$0xff]  ;;  %v103_v17 = vld [vmem:[%s1941_s3 + $0x38] sm:$0xff]  ;;  %v587_v19 = vld [vmem:[#allocation8] sm:$0xff] }
  0x52   :  { %1359 = vmatprep.subr.msk.bf16.mxu0 %vm1729_vm1, %v1357_v30  ;;  %531 = vperm.xlu0 %1432, %v497_v41   ;;  %v95_v18 = vld [vmem:[%s1940_s2 + $0x38] sm:$0xff] }
  0x53   :  { %602 = vperm.xlu1 %1433, %v592_v48  }
  0x56   :  { %597 = vperm.xlu0 %1432, %v591_v47  }
  0x57   :  { %612 = vperm.xlu1 %1433, %v594_v52  }
  0x58   :  { %1314 = vmatpush3.bf16.xpose.msk.msra.mxu1 %vm1729_vm1, %v1309_v29 }
  0x59   :  { %1362 = vmatpush3.bf16.xpose.msk.msra.mxu0 %vm1729_vm1, %v1357_v30  ;;  %1317 = vmatprep.subr.msk.bf16.mxu1 %vm1729_vm1, %v1315_v39 }
  0x5a   :  { %1365 = vmatprep.subr.msk.bf16.mxu0 %vm1729_vm1, %v1363_v40  ;;  %607 = vperm.xlu0 %1432, %v593_v51  }
  0x5b   :  { %743 = vperm.xlu1 %1433, %v735_v58  }
  0x5e   :  { %738 = vperm.xlu0 %1432, %v734_v57  }
  0x5f   :  { %928 = vperm.xlu1 %1433, %v925_v62  }
  0x60   :  { %1320 = vmatpush3.bf16.xpose.msk.msra.mxu1 %vm1729_vm1, %v1315_v39 }
  0x61   :  { %1368 = vmatpush3.bf16.xpose.msk.msra.mxu0 %vm1729_vm1, %v1363_v40  ;;  %1323 = vmatprep.subr.msk.bf16.mxu1 %vm1729_vm1, %v1321_v49 }
  0x62   :  { %1371 = vmatprep.subr.msk.bf16.mxu0 %vm1729_vm1, %v1369_v50  ;;  %842 = vperm.xlu0 %1432, %v839_v61  }
  0x68   :  { %1326 = vmatpush3.bf16.xpose.msk.msra.mxu1 %vm1729_vm1, %v1321_v49 }
  0x69   :  { %1374 = vmatpush3.bf16.xpose.msk.msra.mxu0 %vm1729_vm1, %v1369_v50  ;;  %1329 = vmatprep.subr.msk.bf16.mxu1 %vm1729_vm1, %v1327_v59 }
  0x6a   :  { %1377 = vmatprep.subr.msk.bf16.mxu0 %vm1729_vm1, %v1375_v60 }
  0x70   :  { %1332 = vmatpush3.bf16.xpose.msk.msra.mxu1 %vm1729_vm1, %v1327_v59 }
  0x71   :  { %1380 = vmatpush3.bf16.xpose.msk.msra.mxu0 %vm1729_vm1, %v1375_v60  ;;  %1335 = vmatprep.subr.msk.bf16.mxu1 %vm1729_vm1, %v1333_v4 }
  0x72   :  { %1383 = vmatprep.subr.msk.bf16.mxu0 %vm1729_vm1, %v1381_v5 }
  0x78   :  { %1338 = vmatpush3.bf16.xpose.msk.msra.mxu1 %vm1729_vm1, %v1333_v4 }
  0x79   :  { %1386 = vmatpush3.bf16.xpose.msk.msra.mxu0 %vm1729_vm1, %v1381_v5 }
  0x7f   :  { %1191 = vmatmul.mubr.msk.f32.vlgmr.msra.gmra.mrb[0].mxu1 %vm136_vm0, %v97_v6 }
  0x80   :  { %1235 = vmatmul.mubr.msk.f32.vlgmr.msra.gmra.mrb[0].mxu0 %vm136_vm0, %v89_v7  ;;  %1193 = vmatprep.mubr.msk.f32.mxu1 %vm136_vm0, %v98_v8 }
  0x81   :  { %1237 = vmatprep.mubr.msk.f32.mxu0 %vm136_vm0, %v90_v9 }
  0x83   :  { %1194 = vmatmul.mubr.msk.f32.gmra.mrb[2].mxu1 %vm136_vm0, %v99_v2 }
  0x84   :  { %1238 = vmatmul.mubr.msk.f32.gmra.mrb[2].mxu0 %vm136_vm0, %v91_v10  ;;  %1196 = vmatprep.mubr.msk.f32.mxu1 %vm136_vm0, %v100_v11 }
  0x85   :  { %1240 = vmatprep.mubr.msk.f32.mxu0 %vm136_vm0, %v92_v12 }
  0x87   :  { %1197 = vmatmul.mubr.msk.f32.gmra.mrb[4].mxu1 %vm136_vm0, %v101_v13 }
  0x88   :  { %1241 = vmatmul.mubr.msk.f32.gmra.mrb[4].mxu0 %vm136_vm0, %v93_v14  ;;  %1199 = vmatprep.mubr.msk.f32.mxu1 %vm136_vm0, %v102_v15 }
  0x89   :  { %1243 = vmatprep.mubr.msk.f32.mxu0 %vm136_vm0, %v94_v16 }
  0x8b   :  { %1200 = vmatmul.mubr.msk.f32.gmra.mrb[6].mxu1 %vm136_vm0, %v103_v17 }
  0x8c   :  { %1244 = vmatmul.mubr.msk.f32.gmra.mrb[6].mxu0 %vm136_vm0, %v95_v18 }
  0x8d   :  { %1262 = vmatprep.mubr.msk.f32.mxu0 %vm136_vm0, %v587_v19 }
  0xc2   :  { %v512_v20 = vpop.permute.xlu1 %511 }
  0xc5   :  { %v502_v21 = vpop.permute.xlu0 %501 }
  0xc6   :  { %v517_v25 = vpop.permute.xlu1 %516 }
  0xc9   :  { %v507_v28 = vpop.permute.xlu0 %506 }
  0xca   :  { %v527_v40 = vpop.permute.xlu1 %526 }
  0xcd   :  { %v522_v48 = vpop.permute.xlu0 %521 }
  0xce   :  { %v537_v0 = vpop.permute.xlu1 %536 }
  0xd1   :  { %v532_v4 = vpop.permute.xlu0 %531 }
 0x152   :  { %v1192_v22 = vpop.f32.mrb[0].mxu1 }
 0x153   :  { %v1236_v23 = vpop.f32.mrb[0].mxu0  ;;  %v275_v24 = vpop.f32.mrb[1].mxu1 }
 0x154   :  { %v458_v26 = vadd.f32 %v1236_v23, %v1192_v22  ;;  %v452_v27 = vpop.f32.mrb[1].mxu0 }
 0x155   :  { %v453_v29 = vadd.f32 %v452_v27, %v275_v24 }
 0x156   :  { %v540_v30 = vadd.f32 %v507_v28, %v458_v26  ;;  %v1195_v31 = vpop.f32.mrb[2].mxu1 }
 0x157   :  { %v539_v32 = vadd.f32 %v502_v21, %v453_v29  ;;  %v1239_v33 = vpop.f32.mrb[2].mxu0  ;;  %v285_v34 = vpop.f32.mrb[3].mxu1 }
 0x158   :  { %v548_v35 = vsub.f32 0.0, %v540_v30  ;;  %v468_v36 = vadd.f32 %v1239_v33, %v1195_v31  ;;  %v462_v37 = vpop.f32.mrb[3].mxu0 }
 0x159   :  { %v547_v38 = vsub.f32 0.0, %v539_v32  ;;  %v463_v39 = vadd.f32 %v462_v37, %v285_v34 }
 0x15a   :  { %v557_v41 = vmul.f32 1.442695, %v548_v35  ;;  %v542_v42 = vadd.f32 %v517_v25, %v468_v36  ;;  %v1198_v43 = vpop.f32.mrb[4].mxu1 }
 0x15b   :  { %v555_v44 = vmul.f32 1.442695, %v547_v38  ;;  %v541_v45 = vadd.f32 %v512_v20, %v463_v39  ;;  %v1242_v46 = vpop.f32.mrb[4].mxu0  ;;  %v295_v47 = vpop.f32.mrb[5].mxu1 }
 0x15c   :  { %1434 = vpow2.f32 %v557_v41  ;;  %v550_v49 = vsub.f32 0.0, %v542_v42  ;;  %v478_v50 = vadd.f32 %v1242_v46, %v1198_v43  ;;  %v472_v51 = vpop.f32.mrb[5].mxu0  ;;  %v589_v41 = vld [vmem:[#allocation8 + $0x10] sm:$0xff]  ;;  %v590_v42 = vld [vmem:[#allocation8 + $0x18] sm:$0xff] }
 0x15d   :  { %1436 = vpow2.f32 %v555_v44  ;;  %v549_v52 = vsub.f32 0.0, %v541_v45  ;;  %v473_v53 = vadd.f32 %v472_v51, %v295_v47  ;;  %v732_v43 = vld [vmem:[%s1945_s7] sm:$0xff]  ;;  %v603_v44 = vpop.permute.xlu1 %602  ;;  %v598_v45 = vpop.permute.xlu0 %597 }
 0x15e   :  { %v561_v54 = vmul.f32 1.442695, %v550_v49  ;;  %v544_v55 = vadd.f32 %v527_v40, %v478_v50  ;;  %v1201_v56 = vpop.f32.mrb[6].mxu1  ;;  %v588_v40 = vld [vmem:[#allocation8 + $0x8] sm:$0xff]  ;;  %1276 = vmatprep.mubr.msk.f32.mxu1 %vm746_vm2, %v732_v43  ;;  %v924_v43 = vld [vmem:[%s1949_s11] sm:$0x1] }
 0x15f   :  { %v559_v57 = vmul.f32 1.442695, %v549_v52  ;;  %v543_v58 = vadd.f32 %v522_v48, %v473_v53  ;;  %v1245_v59 = vpop.f32.mrb[6].mxu0  ;;  %v305_v60 = vpop.f32.mrb[7].mxu1 }
 0x160   :  { %1438 = vpow2.f32 %v561_v54  ;;  %v552_v61 = vsub.f32 0.0, %v544_v55  ;;  %v488_v62 = vadd.f32 %v1245_v59, %v1201_v56  ;;  %v482_v63 = vpop.f32.mrb[7].mxu0 }
 0x161   :  { %1440 = vpow2.f32 %v559_v57  ;;  %v551_v1 = vsub.f32 0.0, %v543_v58  ;;  %v483_v3 = vadd.f32 %v482_v63, %v305_v60  ;;  %v613_v51 = vpop.permute.xlu1 %612  ;;  %v608_v54 = vpop.permute.xlu0 %607 }
 0x162   :  { %v565_v5 = vmul.f32 1.442695, %v552_v61  ;;  %v546_v6 = vadd.f32 %v537_v0, %v488_v62 }
 0x163   :  { %v563_v7 = vmul.f32 1.442695, %v551_v1  ;;  %v545_v8 = vadd.f32 %v532_v4, %v483_v3 }
 0x164   :  { %1442 = vpow2.f32 %v565_v5  ;;  %v554_v9 = vsub.f32 0.0, %v546_v6 }
 0x165   :  { %1444 = vpow2.f32 %v563_v7  ;;  %v553_v2 = vsub.f32 0.0, %v545_v8 }
 0x166   :  { %v1435_v10 = vpop.eup %1434  ;;  %v569_v11 = vmul.f32 1.442695, %v554_v9 }
 0x167   :  { %v1437_v12 = vpop.eup %1436  ;;  %v572_v13 = vadd.f32 1.0, %v1435_v10  ;;  %v567_v14 = vmul.f32 1.442695, %v553_v2 }
 0x168   :  { %v571_v15 = vadd.f32 1.0, %v1437_v12  ;;  %1446 = vpow2.f32 %v569_v11 }
 0x169   :  { %1448 = vrcp.f32 %v572_v13 }
 0x16a   :  { %v1439_v16 = vpop.eup %1438  ;;  %1450 = vrcp.f32 %v571_v15  ;;  %v1598_v15 = vmov 0.0|0.0  }
 0x16b   :  { %v1441_v17 = vpop.eup %1440  ;;  %v574_v18 = vadd.f32 1.0, %v1439_v16  ;;  %1452 = vpow2.f32 %v567_v14  ;;  %v733_v14 = vld [vmem:[%s1945_s7 + $0x8] sm:$0xff]  ;;  %v1600_v16 = vmov 0.0  }
 0x16c   :  { %v573_v19 = vadd.f32 1.0, %v1441_v17  ;;  %v744_v17 = vpop.permute.xlu1 %743 }
 0x16d   :  { %1454 = vrcp.f32 %v574_v18 }
 0x16e   :  { %v1443_v20 = vpop.eup %1442  ;;  %1456 = vrcp.f32 %v573_v19  ;;  %v739_v19 = vpop.permute.xlu0 %738 }
 0x16f   :  { %v1445_v21 = vpop.eup %1444  ;;  %v576_v22 = vadd.f32 1.0, %v1443_v20 }
 0x170   :  { %v575_v23 = vadd.f32 1.0, %v1445_v21 }
 0x171   :  { %1458 = vrcp.f32 %v576_v22 }
 0x172   :  { %v1447_v24 = vpop.eup %1446  ;;  %1460 = vrcp.f32 %v575_v23 }
 0x173   :  { %v1449_v25 = vpop.eup %1448  ;;  %v578_v26 = vadd.f32 1.0, %v1447_v24 }
 0x174   :  { %v1451_v27 = vpop.eup %1450 }
 0x175   :  { %v1453_v28 = vpop.eup %1452  ;;  %v1387_v29 = vpack.c.bf16 %v1449_v25, %v1451_v27  ;;  %1462 = vrcp.f32 %v578_v26 }
 0x176   :  { %v577_v30 = vadd.f32 1.0, %v1453_v28 }
 0x177   :  { %v1455_v31 = vpop.eup %1454  ;;  %1388 = vmatprep.subr.bf16.mxu0 %v1387_v29 }
 0x178   :  { %v1457_v32 = vpop.eup %1456  ;;  %1464 = vrcp.f32 %v577_v30  ;;  %1390 = vmatpush3.bf16.msra.mxu0 %v1387_v29 }
 0x179   :  { %v1391_v33 = vpack.c.bf16 %v1455_v31, %v1457_v32 }
 0x17b   :  { %v1459_v34 = vpop.eup %1458  ;;  %1392 = vmatprep.subr.bf16.mxu0 %v1391_v33 }
 0x17c   :  { %v1461_v35 = vpop.eup %1460  ;;  %1394 = vmatpush3.bf16.msra.mxu0 %v1391_v33 }
 0x17d   :  { %v1395_v36 = vpack.c.bf16 %v1459_v34, %v1461_v35  ;;  %v838_v34 = vld [vmem:[%s1947_s9] sm:$0xff]  ;;  %v843_v35 = vpop.permute.xlu0 %842  ;;  %s1601_s9 = smov [#allocation9]  }
 0x17e   :  { %s1021_s11 = sshll.u32 %s1601_s9, 4  ;;  %s1022_s11 = int_to_ptr.vmem [resolvable:$true] %s1021_s11 }
 0x17f   :  { %1396 = vmatprep.subr.bf16.mxu0 %v1395_v36  ;;  %v1463_v37 = vpop.eup %1462  ;;  %s1564_s14 = scalar_lea.vmem %s1022_s11, 16  ;;  %s1568_s15 = scalar_lea.vmem %s1022_s11, 32 }
 0x180   :  { %1398 = vmatpush3.bf16.msra.mxu0 %v1395_v36  ;;  %p1565_p10 = scmp.ne.s32.totalorder %s1022_s11, %s1564_s14  ;;  %p1569_p11 = scmp.lt.s32.totalorder %s1022_s11, %s1022_s11 }
 0x181   :  { %p1570_p12 = scmp.lt.s32.totalorder %s1568_s15, %s1564_s14 }
 0x182   :  { %v1465_v38 = vpop.eup %1464 }
 0x183   :  { %v1399_v39 = vpack.c.bf16 %v1463_v37, %v1465_v38  ;;  %p1571_p13 = por %p1570_p12, %p1569_p11 }
 0x185   :  { %1400 = vmatprep.subr.bf16.mxu0 %v1399_v39  ;;  %p1572_p0 = pnand %p1571_p13, %p1565_p10 }
 0x186   :  { %1402 = vmatpush3.bf16.msra.mxu0 %v1399_v39 }
 0x189   :  { %1263 = vmatmul.mubr.msk.f32.vlgmr.msra.gmra.mrb[8].mxu0 %vm136_vm0, %v588_v40 }
 0x18a   :  { %1265 = vmatprep.mubr.msk.f32.mxu0 %vm136_vm0, %v589_v41 }
 0x18d   :  { %1266 = vmatmul.mubr.msk.f32.gmra.mrb[10].mxu0 %vm136_vm0, %v590_v42 }
 0x25c   :  { %v1264_v46 = vpop.f32.mrb[8].mxu0 }
 0x25d   :  { %v699_v47 = vadd.f32 %v1264_v46, %v603_v44  ;;  %v693_v48 = vpop.f32.mrb[9].mxu0 }
 0x25e   :  { %v694_v49 = vadd.f32 %v693_v48, %v598_v45  ;;  %v931_v45 = vlaneseq  ;;  %v929_v48 = vpop.permute.xlu1 %928 }
 0x25f   :  { %v713_v50 = vsub.f32 0.0, %v699_v47 }
 0x260   :  { %v712_v52 = vsub.f32 0.0, %v694_v49  ;;  %v1267_v53 = vpop.f32.mrb[10].mxu0  ;;  %v932_v46 = vshrl.u32 %v931_v45, 7 }
 0x261   :  { %v718_v55 = vmul.f32 1.442695, %v713_v50  ;;  %v709_v56 = vadd.f32 %v1267_v53, %v613_v51  ;;  %v703_v57 = vpop.f32.mrb[11].mxu0 }
 0x262   :  { %v716_v58 = vmul.f32 1.442695, %v712_v52  ;;  %v704_v59 = vadd.f32 %v703_v57, %v608_v54  ;;  %v933_v47 = vsub.s32 0, %v932_v46 }
 0x263   :  { %1466 = vpow2.f32 %v718_v55  ;;  %v715_v60 = vsub.f32 0.0, %v709_v56 }
 0x264   :  { %1468 = vpow2.f32 %v716_v58  ;;  %v714_v61 = vsub.f32 0.0, %v704_v59  ;;  %v934_v49 = vrot.slane %v929_v48, %v933_v47 }
 0x265   :  { %v722_v62 = vmul.f32 1.442695, %v715_v60 }
 0x266   :  { %v720_v63 = vmul.f32 1.442695, %v714_v61 }
 0x267   :  { %1470 = vpow2.f32 %v722_v62 }
 0x268   :  { %1472 = vpow2.f32 %v720_v63 }
 0x26d   :  { %v1467_v0 = vpop.eup %1466 }
 0x26e   :  { %v1469_v1 = vpop.eup %1468  ;;  %v725_v3 = vadd.f32 1.0, %v1467_v0 }
 0x26f   :  { %v724_v4 = vadd.f32 1.0, %v1469_v1 }
 0x270   :  { %1474 = vrcp.f32 %v725_v3 }
 0x271   :  { %v1471_v5 = vpop.eup %1470  ;;  %1476 = vrcp.f32 %v724_v4 }
 0x272   :  { %v1473_v6 = vpop.eup %1472  ;;  %v727_v7 = vadd.f32 1.0, %v1471_v5 }
 0x273   :  { %v726_v8 = vadd.f32 1.0, %v1473_v6 }
 0x274   :  { %1478 = vrcp.f32 %v727_v7 }
 0x275   :  { %1480 = vrcp.f32 %v726_v8 }
 0x27a   :  { %v1475_v9 = vpop.eup %1474 }
 0x27b   :  { %v1477_v2 = vpop.eup %1476 }
 0x27c   :  { %v1403_v10 = vpack.c.bf16 %v1475_v9, %v1477_v2 }
 0x27e   :  { %v1479_v11 = vpop.eup %1478  ;;  %1404 = vmatprep.subr.bf16.mxu1 %v1403_v10 }
 0x27f   :  { %v1481_v12 = vpop.eup %1480  ;;  %1406 = vmatpush3.bf16.msra.mxu1 %v1403_v10 }
 0x280   :  { %v1407_v13 = vpack.c.bf16 %v1479_v11, %v1481_v12 }
 0x282   :  { %1408 = vmatprep.subr.bf16.mxu1 %v1407_v13 }
 0x283   :  { %1410 = vmatpush3.bf16.msra.mxu1 %v1407_v13 }
 0x284   :  { %1411 = vmatprep.subr.bf16.mxu1 %v1598_v15 }
 0x286   :  { %1277 = vmatmul.mubr.msk.f32.vlgmr.msra.gmra.mrb[8].mxu1 %vm746_vm2, %v733_v14 }
 0x287   :  { %1283 = vmatprep.mubr.msk.f32.mxu1 %vm1599_vm3, %v1600_v16 }
 0x359   :  { %v1278_v18 = vpop.f32.mrb[8].mxu1 }
 0x35a   :  { %v825_v20 = vadd.f32 %v1278_v18, %v744_v17  ;;  %v819_v21 = vpop.f32.mrb[9].mxu1 }
 0x35b   :  { %v820_v22 = vadd.f32 %v819_v21, %v739_v19 }
 0x35c   :  { %v829_v23 = vsub.f32 0.0, %v825_v20 }
 0x35d   :  { %v828_v24 = vsub.f32 0.0, %v820_v22 }
 0x35e   :  { %v832_v25 = vmul.f32 1.442695, %v829_v23 }
 0x35f   :  { %v830_v26 = vmul.f32 1.442695, %v828_v24 }
 0x360   :  { %1482 = vpow2.f32 %v832_v25 }
 0x361   :  { %1484 = vpow2.f32 %v830_v26 }
 0x36a   :  { %v1483_v27 = vpop.eup %1482 }
 0x36b   :  { %v1485_v28 = vpop.eup %1484  ;;  %v835_v29 = vadd.f32 1.0, %v1483_v27 }
 0x36c   :  { %v834_v30 = vadd.f32 1.0, %v1485_v28 }
 0x36d   :  { %1486 = vrcp.f32 %v835_v29 }
 0x36e   :  { %1488 = vrcp.f32 %v834_v30 }
 0x377   :  { %v1487_v31 = vpop.eup %1486 }
 0x378   :  { %v1489_v32 = vpop.eup %1488 }
 0x379   :  { %v1412_v33 = vpack.c.bf16 %v1487_v31, %v1489_v32 }
 0x37b   :  { %1413 = vmatpush3.bf16.msra.mxu1 %v1412_v33 }
 0x37c   :  { %1286 = vmatprep.subr.mxu1 %v1600_v16 }
 0x37e   :  { %1284 = vmatmul.mubr.msk.f32.vlgmr.msra.gmra.mrb[10].mxu1 %vm845_vm4, %v838_v34 }
 0x37f   :  { %1288 = vmatprep.mubr.msk.f32.mxu1 %vm1599_vm3, %v1600_v16 }
 0x451   :  { %v915_v36 = vpop.f32.mrb[10].mxu1 }
 0x452   :  { %v916_v37 = vadd.f32 %v915_v36, %v843_v35  ;;  %v1285_v38 = vpop.f32.mrb[11].mxu1 }
 0x454   :  { %v919_v39 = vsub.f32 0.0, %v916_v37 }
 0x456   :  { %v920_v40 = vmul.f32 1.442695, %v919_v39 }
 0x458   :  { %1490 = vpow2.f32 %v920_v40 }
 0x462   :  { %v1491_v41 = vpop.eup %1490 }
 0x463   :  { %v922_v42 = vadd.f32 1.0, %v1491_v41 }
 0x465   :  { %1492 = vrcp.f32 %v922_v42 }
 0x46f   :  { %v1493_v44 = vpop.eup %1492 }
 0x470   :  { %1287 = vmatpush3.msra.mxu1 %v1493_v44 }
 0x471   :  { %1289 = vmatmul.mubr.msk.f32.vlgmr.msra.gmra.mrb[12].mxu1 %vm935_vm5, %v924_v43 }
 0x544   :  { %v1005_v50 = vpop.f32.mrb[12].mxu1 }
 0x545   :  { %v1006_v51 = vadd.f32 %v1005_v50, %v934_v49  ;;  %v1290_v52 = vpop.f32.mrb[13].mxu1 }
 0x547   :  { %v1009_v53 = vsub.f32 0.0, %v1006_v51 }
 0x549   :  { %v1010_v54 = vmul.f32 1.442695, %v1009_v53 }
 0x54b   :  { %1494 = vpow2.f32 %v1010_v54 }
 0x555   :  { %v1495_v55 = vpop.eup %1494 }
 0x556   :  { %v1012_v56 = vadd.f32 1.0, %v1495_v55 }
 0x558   :  { %1496 = vrcp.f32 %v1012_v56 }
 0x562   :  { %v1497_v57 = vpop.eup %1496 }
 0x563   :  { %1014 = vst [vmem:[#allocation9] sm:$0x1] %v1497_v57 }
 0x564   :  { %1575 = shalt.err (!%p1572_p0)
}
 0x565   :  { %s1576_s5 = scalar_lea.hbm %s1951_s13, 16 }
 0x566   :  { %p1577_p1 = scmp.ne.s32.totalorder %s1951_s13, %s1576_s5  ;;  %p1580_p2 = scmp.lt.u32.totalorder %s1576_s5, %s1951_s13 }
 0x568   :  { %p1582_p3 = pnand %p1580_p2, %p1577_p1 }
 0x56a   :  { %1585 = shalt.err (!%p1582_p3)
}
 0x56b   :  { %1024 = dma.vmem_to_hbm [thread:$0]  %s1022_s11, 16, %s1951_s13, [#allocation5]  }
 0x56c   :  { %1590 = dma.done.wait [#allocation5], 16  }
 0x56d   :  { %1591 = vsyncadd [#allocation5], 4294967280 }
 0x56e   :  { %1028 = vsyncpa [#allocation4], 1 }
 0x56f   :  { %1029 = vsyncpa [#allocation7], 1 }
 0x570   :  { %1030 = vsyncpa [#allocation5], 1 }

</bundles_post_ra>
